<compile_context>
chip_gen: v6e
topology: v6e:2x2x1
jax: 0.10.0
libtpu: 0.0.40
codegen_flags: <defaults>
</compile_context>

<pallas_src>
import functools

import jax
import jax.numpy as jnp
from jax.experimental import pallas as pl
from jax.experimental.pallas import tpu as pltpu


def pool_agg_kernel(x_ref, neibs_ref, w1_ref, b1_ref, wtop_ref, wbot_ref, out_ref,
                    *, n_neibs, pool):
    x = x_ref[...]            # (TB, D)
    neibs = neibs_ref[...]    # (TB*N, D)   batch-major rows (b*N + n)
    w1 = w1_ref[...]          # (D, H)
    b1 = b1_ref[...]          # (1, H)
    w_top = wtop_ref[...]     # (D, 2*O)  = [Wx | 0]
    w_bot = wbot_ref[...]     # (H, 2*O)  = [0 | Wn]

    tb = x.shape[0]

    # mlp: Linear(D->H, bias) + ReLU, one tall matmul over all neighbors in this tile.
    h = jnp.dot(neibs, w1, preferred_element_type=jnp.float32) + b1   # (TB*N, H)
    h = jnp.maximum(h, 0.0)

    # pool over the neighbor dimension (view(B, N, H) then pool_fn along dim=1).
    h3 = h.reshape(tb, n_neibs, h.shape[-1])                          # (TB, N, H)
    if pool == "max":
        agg = jnp.max(h3, axis=1)                                     # (TB, H)
    else:  # mean
        agg = jnp.mean(h3, axis=1)                                    # (TB, H)

    # Fused output: [x @ Wx , agg @ Wn] built as x@[Wx|0] + agg@[0|Wn] -> (TB, 2*O),
    # then ReLU and ONE full-block store (no masked strided partial stores).
    out = (jnp.dot(x, w_top, preferred_element_type=jnp.float32) +
           jnp.dot(agg, w_bot, preferred_element_type=jnp.float32))
    out_ref[...] = jnp.maximum(out, 0.0)


def pool_aggregator(x, neibs, w1, b1, wx, wn, *, n_neibs, block_b=256, pool="max"):
    B, D = x.shape
    H = w1.shape[1]
    O = wx.shape[1]
    assert neibs.shape == (B * n_neibs, D), "neibs must be (B*N, D), batch-major"

    TB = min(block_b, B)
    assert B % TB == 0, "batch must be divisible by the batch tile"
    grid = (B // TB,)

    # Zero-padded projection weights so the kernel produces the concatenated output
    # in a single (TB, 2*O) matmul-accumulate + one store (built once, outside the kernel).
    w_top = jnp.concatenate([wx, jnp.zeros((D, O), jnp.float32)], axis=1)  # (D, 2*O)
    w_bot = jnp.concatenate([jnp.zeros((H, O), jnp.float32), wn], axis=1)  # (H, 2*O)
    b1_2d = b1.reshape(1, H)

    kernel = functools.partial(pool_agg_kernel, n_neibs=n_neibs, pool=pool)

    return pl.pallas_call(
        kernel,
        grid=grid,
        in_specs=[
            pl.BlockSpec((TB, D), lambda i: (i, 0)),              # x, tiled over batch
            pl.BlockSpec((TB * n_neibs, D), lambda i: (i, 0)),    # neibs, tiled over batch
            pl.BlockSpec((D, H), lambda i: (0, 0)),               # W1 (resident)
            pl.BlockSpec((1, H), lambda i: (0, 0)),               # b1 (resident)
            pl.BlockSpec((D, 2 * O), lambda i: (0, 0)),           # [Wx|0] (resident)
            pl.BlockSpec((H, 2 * O), lambda i: (0, 0)),           # [0|Wn] (resident)
        ],
        out_specs=pl.BlockSpec((TB, 2 * O), lambda i: (i, 0)),
        out_shape=jax.ShapeDtypeStruct((B, 2 * O), jnp.float32),
        compiler_params=pltpu.CompilerParams(
            dimension_semantics=("parallel",),
            vmem_limit_bytes=32 * 1024 * 1024,
        ),
    )(x, neibs, w1, b1_2d, w_top, w_bot)


def reference(x, neibs, w1, b1, wx, wn, *, n_neibs, pool="max"):
    B, D = x.shape
    h = jax.nn.relu(neibs @ w1 + b1)                  # (B*N, H)
    h3 = h.reshape(B, n_neibs, -1)                    # (B, N, H)
    agg = jnp.max(h3, axis=1) if pool == "max" else jnp.mean(h3, axis=1)
    out = jnp.concatenate([x @ wx, agg @ wn], axis=1)
    return jax.nn.relu(out)


if __name__ == "__main__":
    # small shapes: batch=16, neighbors-per-node=8, input_dim=16, hidden_dim=32, output_dim=8
    B, N, D, H, O = 16, 8, 16, 32, 8
    key = jax.random.PRNGKey(0)
    k1, k2, k3, k4, k5, k6 = jax.random.split(key, 6)

    x = jax.random.normal(k1, (B, D), jnp.float32)
    neibs = jax.random.normal(k2, (B * N, D), jnp.float32)
    # deterministic synthetic parameters (nn.Linear weights stored (in, out))
    w1 = 0.1 * jax.random.normal(k3, (D, H), jnp.float32)
    b1 = 0.1 * jax.random.normal(k4, (H,), jnp.float32)
    wx = 0.1 * jax.random.normal(k5, (D, O), jnp.float32)
    wn = 0.1 * jax.random.normal(k6, (H, O), jnp.float32)

    # block_b=8 -> grid=(2,) exercises the batch-tiled, parallel-semantics path.
    out = pool_aggregator(x, neibs, w1, b1, wx, wn, n_neibs=N, block_b=8, pool="max")
    out = jax.block_until_ready(out)

    ref = reference(x, neibs, w1, b1, wx, wn, n_neibs=N, pool="max")
    assert out.shape == (B, 2 * O)
    assert jnp.allclose(out, ref, atol=1e-5, rtol=1e-5), "mismatch vs JAX reference"
    print("KERNEL_OK")
</pallas_src>

<mosaic_0001>
module attributes {stable_mosaic.version = 11 : i64} {
  func.func @pool_agg_kernel(%arg0: i32, %arg1: memref<8x16xf32, #tpu.memory_space<vmem>>, %arg2: memref<64x16xf32, #tpu.memory_space<vmem>>, %arg3: memref<16x32xf32, #tpu.memory_space<vmem>>, %arg4: memref<1x32xf32, #tpu.memory_space<vmem>>, %arg5: memref<16x16xf32, #tpu.memory_space<vmem>>, %arg6: memref<32x16xf32, #tpu.memory_space<vmem>>, %arg7: memref<8x16xf32, #tpu.memory_space<vmem>>) attributes {dimension_semantics = [#tpu.dimension_semantics<parallel>], iteration_bounds = array<i64: 2>, scalar_prefetch = 0 : i64, scratch_operands = 0 : i64, tpu.core_type = #tpu.core_type<tc>, window_params = [{transform_indices = @transform_0, window_bounds = array<i64: 8, 16>}, {transform_indices = @transform_1, window_bounds = array<i64: 64, 16>}, {pipeline_mode = #tpu.pipeline_mode<synchronous>, transform_indices = @transform_2, window_bounds = array<i64: 16, 32>}, {pipeline_mode = #tpu.pipeline_mode<synchronous>, transform_indices = @transform_3, window_bounds = array<i64: 1, 32>}, {pipeline_mode = #tpu.pipeline_mode<synchronous>, transform_indices = @transform_4, window_bounds = array<i64: 16, 16>}, {pipeline_mode = #tpu.pipeline_mode<synchronous>, transform_indices = @transform_5, window_bounds = array<i64: 32, 16>}, {transform_indices = @transform_6, window_bounds = array<i64: 8, 16>}]} {
    %c0 = arith.constant 0 : index
    %c0_0 = arith.constant 0 : index
    %0 = vector.load %arg1[%c0, %c0_0] : memref<8x16xf32, #tpu.memory_space<vmem>>, vector<8x16xf32>
    %c0_1 = arith.constant 0 : index
    %c0_2 = arith.constant 0 : index
    %1 = vector.load %arg2[%c0_1, %c0_2] : memref<64x16xf32, #tpu.memory_space<vmem>>, vector<64x16xf32>
    %c0_3 = arith.constant 0 : index
    %c0_4 = arith.constant 0 : index
    %2 = vector.load %arg3[%c0_3, %c0_4] : memref<16x32xf32, #tpu.memory_space<vmem>>, vector<16x32xf32>
    %c0_5 = arith.constant 0 : index
    %c0_6 = arith.constant 0 : index
    %3 = vector.load %arg4[%c0_5, %c0_6] : memref<1x32xf32, #tpu.memory_space<vmem>>, vector<1x32xf32>
    %c0_7 = arith.constant 0 : index
    %c0_8 = arith.constant 0 : index
    %4 = vector.load %arg5[%c0_7, %c0_8] : memref<16x16xf32, #tpu.memory_space<vmem>>, vector<16x16xf32>
    %c0_9 = arith.constant 0 : index
    %c0_10 = arith.constant 0 : index
    %5 = vector.load %arg6[%c0_9, %c0_10] : memref<32x16xf32, #tpu.memory_space<vmem>>, vector<32x16xf32>
    %cst = arith.constant dense<0.000000e+00> : vector<64x32xf32>
    %6 = tpu.matmul %1, %2, %cst {dimension_numbers = #tpu.dot_dimension_numbers<[1], [0], [0], [1], [0, 0, 1, 1], [], []>} : vector<64x16xf32>, vector<16x32xf32>, vector<64x32xf32> -> vector<64x32xf32>
    %7 = vector.broadcast %3 : vector<1x32xf32> to vector<64x32xf32>
    %8 = arith.addf %6, %7 : vector<64x32xf32>
    %cst_11 = arith.constant 0.000000e+00 : f32
    %9 = vector.broadcast %cst_11 : f32 to vector<64x32xf32>
    %10 = arith.maximumf %8, %9 : vector<64x32xf32>
    %11 = vector.shape_cast %10 : vector<64x32xf32> to vector<8x8x32xf32>
    %cst_12 = arith.constant dense<0xFF800000> : vector<8x32xf32>
    %12 = vector.multi_reduction <maximumf>, %11, %cst_12 [1] : vector<8x8x32xf32> to vector<8x32xf32>
    %cst_13 = arith.constant dense<0.000000e+00> : vector<8x16xf32>
    %13 = tpu.matmul %0, %4, %cst_13 {dimension_numbers = #tpu.dot_dimension_numbers<[1], [0], [0], [1], [0, 0, 1, 1], [], []>} : vector<8x16xf32>, vector<16x16xf32>, vector<8x16xf32> -> vector<8x16xf32>
    %cst_14 = arith.constant dense<0.000000e+00> : vector<8x16xf32>
    %14 = tpu.matmul %12, %5, %cst_14 {dimension_numbers = #tpu.dot_dimension_numbers<[1], [0], [0], [1], [0, 0, 1, 1], [], []>} : vector<8x32xf32>, vector<32x16xf32>, vector<8x16xf32> -> vector<8x16xf32>
    %15 = arith.addf %13, %14 : vector<8x16xf32>
    %cst_15 = arith.constant 0.000000e+00 : f32
    %16 = vector.broadcast %cst_15 : f32 to vector<8x16xf32>
    %17 = arith.maximumf %15, %16 : vector<8x16xf32>
    %c0_16 = arith.constant 0 : index
    %c0_17 = arith.constant 0 : index
    %18 = vector.load %arg7[%c0_16, %c0_17] : memref<8x16xf32, #tpu.memory_space<vmem>>, vector<8x16xf32>
    tpu.vector_store %arg7[%c0_16, %c0_17], %17 {strides = array<i32>} : memref<8x16xf32, #tpu.memory_space<vmem>>, vector<8x16xf32>,
    return
  }
  func.func @transform_0(%arg0: i32) -> (i32, i32) {
    %c0_i32 = arith.constant 0 : i32
    %c0_i32_0 = arith.constant 0 : i32
    return %arg0, %c0_i32 : i32, i32
  }
  func.func @transform_1(%arg0: i32) -> (i32, i32) {
    %c0_i32 = arith.constant 0 : i32
    %c0_i32_0 = arith.constant 0 : i32
    return %arg0, %c0_i32 : i32, i32
  }
  func.func @transform_2(%arg0: i32) -> (i32, i32) {
    %c0_i32 = arith.constant 0 : i32
    %c0_i32_0 = arith.constant 0 : i32
    %c0_i32_1 = arith.constant 0 : i32
    return %c0_i32, %c0_i32_0 : i32, i32
  }
  func.func @transform_3(%arg0: i32) -> (i32, i32) {
    %c0_i32 = arith.constant 0 : i32
    %c0_i32_0 = arith.constant 0 : i32
    %c0_i32_1 = arith.constant 0 : i32
    return %c0_i32, %c0_i32_0 : i32, i32
  }
  func.func @transform_4(%arg0: i32) -> (i32, i32) {
    %c0_i32 = arith.constant 0 : i32
    %c0_i32_0 = arith.constant 0 : i32
    %c0_i32_1 = arith.constant 0 : i32
    return %c0_i32, %c0_i32_0 : i32, i32
  }
  func.func @transform_5(%arg0: i32) -> (i32, i32) {
    %c0_i32 = arith.constant 0 : i32
    %c0_i32_0 = arith.constant 0 : i32
    %c0_i32_1 = arith.constant 0 : i32
    return %c0_i32, %c0_i32_0 : i32, i32
  }
  func.func @transform_6(%arg0: i32) -> (i32, i32) {
    %c0_i32 = arith.constant 0 : i32
    %c0_i32_0 = arith.constant 0 : i32
    return %arg0, %c0_i32 : i32, i32
  }
}

</mosaic_0001>

<bundles_post_ra>
// kernel: tpu_custom_call.1
= control target key start
LH: loop header
LB: loop body
LE: loop exit
PB: predicated region body
PF: predicated region fallthrough
CT: control target
= control target key end

     0   :  { %11 = vsyncpa [#allocation3], 0  ;;  %s1105_s0 = inlined_call_operand.vmem [shape: f32[16,16], index: 0, kind: input, shape index: {}]   ;;  %s1106_s1 = inlined_call_operand.vmem [shape: f32[128,16], index: 1, kind: input, shape index: {}]   ;;  %s1107_s2 = inlined_call_operand.vmem [shape: f32[16,32], index: 2, kind: input, shape index: {}]   ;;  %s1108_s3 = inlined_call_operand.vmem [shape: f32[1,32], index: 3, kind: input, shape index: {}]   ;;  %s1109_s4 = inlined_call_operand.vmem [shape: f32[16,16], index: 4, kind: input, shape index: {}]   ;;  %s1110_s5 = inlined_call_operand.vmem [shape: f32[32,16], index: 5, kind: input, shape index: {}]   ;;  %s1111_s6 = inlined_call_operand.hbm [shape: f32[16,16], index: 6, kind: output, shape index: {}]  }
   0x1   :  { %13 = vsyncpa [#allocation3 + $0x1], 0  ;;  %s958_s21 = smov 0   ;;  %s960_s22 = smov 0  }
   0x2   :  { %s962_s23 = smov 0   ;;  %s964_s24 = smov 0  }
   0x3 LB: > { %s979_s25 = sadd.s32 4294967295, %s918_s24   ;;  %s742_s26 = sadd.s32 4294967294, %s918_s24   ;;  %s918_s24 = sphi %s964_s24, %s1117_s24   ;;  %s914_s23 = sphi %s962_s23, %s1116_s23   ;;  %s910_s22 = sphi %s960_s22, %s1115_s22   ;;  %s906_s21 = sphi %s958_s21, %s1114_s21  }
   0x4   : > { %s983_s27 = sadd.s32 1, %s918_s24   ;;  %s162_s28 = sadd.s32 1, %s914_s23 }
   0x5   : > { %s159_s29 = ssub.s32 %s918_s24, %s983_s27  ;;  %p172_p0 = scmp.ne.s32.totalorder %s914_s23, %s910_s22 }
   0x6   : > { %p160_p1 = scmp.eq.s32.totalorder %s159_s29, 0  ;;  %p173_p2 = scmp.eq.s32.totalorder %s979_s25, 1 }
   0x7   : > { %p178_p3 = scmp.ne.s32.totalorder %s910_s22, %s906_s21  ;;  %p179_p4 = scmp.eq.s32.totalorder %s742_s26, 1 }
   0x8   : > { %s994_s30 = scalar_select %p160_p1, %s914_s23, %s162_s28  }
   0x9   : > { %p996_p5 = por %p173_p2, %p172_p0  ;;  %p1000_p6 = por %p179_p4, %p178_p3 }
   0xa   : > { %p745_p7 = scmp.ge.s32.totalorder %s918_s24, 1  ;;  %p225_p8 = scmp.lt.s32.totalorder %s918_s24, 3 }
   0xc   : > { %p226_p9 = pnand %p745_p7, %p225_p8 }
   0xd   : > { %s748_s13 = sshll.u32 (!%p226_p9), %s979_s25, 3  ;;  %p259_p11 = scmp.lt.s32.totalorder (!%p226_p9), %s979_s25, 1 }
   0xe   : > { %229 = sbr.rel (%p226_p9) target bundleno = 464 (0x1d0), region = 44  ;;  %p264_p10 = scmp.lt.s32.totalorder (!%p226_p9), %s748_s13, 15 }
   0xf   : > { %s256_s28 = sand.u32 (!%p226_p9), 1, %s910_s22   ;;  %s762_s9 = sshll.u32 (!%p226_p9), %s979_s25, 7 }
  0x10   : > { %s746_s29 = sshll.u32 (!%p226_p9), %s256_s28, 3  ;;  %s658_s15 = scalar_lea.sflag (!%p226_p9), [#allocation3], %s256_s28 }
  0x11   : > { %s258_s10 = scalar_lea.vmem (!%p226_p9), [#allocation2], %s746_s29 }
  0x12   : > { %s671_s11 = sshll.u32 (!%p226_p9), %s258_s10, 4  ;;  %s672_s11 = int_to_ptr.vmem [resolvable:$true] %s671_s11 }
  0x13   : > { %v279_v0 = vld [vmem:[%s1107_s2 + $0x8] sm:$0xff]  ;;  %v278_v1 = vld [vmem:[%s1107_s2] sm:$0xff]  ;;  %s1119_s13 = smov (!%p264_p10, %s748_s13), 15  ;;  %vm293_vm0 = vcmask 130048   ;;  %v920_v10 = vmov 0.0   ;;  %v286_v11 = vld [vmem:[%s1110_s5 + $0x18] sm:$0xff] }
  0x14   : > { %783 = vmatprep.subr.mxu0 %v279_v0  ;;  %s749_s14 = sshll.u32 %s1119_s13, 3  ;;  %799 = vmatprep.subr.mxu1 %v920_v10  ;;  %v285_v12 = vld [vmem:[%s1110_s5 + $0x10] sm:$0xff]  ;;  %v284_v13 = vld [vmem:[%s1110_s5 + $0x8] sm:$0xff]  ;;  %v283_v14 = vld [vmem:[%s1110_s5] sm:$0xff]  ;;  %vm921_vm1 = vmmov 0   ;;  %vm431_vm2 = vcmask 261120  }
  0x15   : > { %784 = vmatpush3.msra.mxu0 %v279_v0  ;;  %s267_s17 = scalar_lea.vmem %s1106_s1, %s749_s14  ;;  %800 = vmatpush3.msra.mxu1 %v286_v11  ;;  %v750_v15 = vld [vmem:[%s1108_s3] ss:$0 sm:$0xff]  ;;  %vm496_vm3 = vcmask 1041409   ;;  %vm498_vm4 = vcmask 1042434   ;;  %vm500_vm5 = vcmask 1043459   ;;  %vm502_vm6 = vcmask 1044484  }
  0x16   : > { %785 = vmatprep.subr.mxu0 %v278_v1  ;;  %v270_v2 = vld [vmem:[%s267_s17] sm:$0xff]  ;;  %v271_v3 = vld [vmem:[%s267_s17 + $0x8] sm:$0xff]  ;;  %v272_v4 = vld [vmem:[%s267_s17 + $0x10] sm:$0xff]  ;;  %801 = vmatprep.subr.mxu1 %v920_v10  ;;  %s260_s13 = scalar_select %p259_p11, %s979_s25, 1  ;;  %vm504_vm7 = vcmask 1045509   ;;  %vm506_vm8 = vcmask 1046534  }
  0x17   : > { %786 = vmatpush3.msra.mxu0 %v278_v1  ;;  %787 = vmatprep.mubr.msk.f32.mxu0 %vm293_vm0, %v270_v2  ;;  %v273_v5 = vld [vmem:[%s267_s17 + $0x18] sm:$0xff]  ;;  %v274_v6 = vld [vmem:[%s267_s17 + $0x20] sm:$0xff]  ;;  %v275_v7 = vld [vmem:[%s267_s17 + $0x28] sm:$0xff]  ;;  %vm508_vm9 = vcmask 1047559   ;;  %s858_s16 = scalar_lea.vmem %s672_s11, 128 }
  0x18   : > { %788 = vmatmul.mubr.msk.f32.vlgmr.msra.gmra.mxu0 %vm293_vm0, %v271_v3  ;;  %v276_v8 = vld [vmem:[%s267_s17 + $0x30] sm:$0xff]  ;;  %v277_v9 = vld [vmem:[%s267_s17 + $0x38] sm:$0xff]  ;;  %802 = vmatpush3.msra.mxu1 %v285_v12  ;;  %s747_s14 = sshll.u32 %s260_s13, 3  ;;  %p859_p12 = scmp.ne.s32.totalorder %s672_s11, %s858_s16 }
  0x19   : > { %790 = vmatprep.mubr.msk.f32.mxu0 %vm293_vm0, %v272_v4  ;;  %803 = vmatprep.subr.mxu1 %v920_v10  ;;  %s262_s19 = scalar_lea.vmem %s1105_s0, %s747_s14  ;;  %s669_s14 = scalar_lea.hbm %s1111_s6, %s762_s9 }
  0x1a   : > { %804 = vmatpush3.msra.mxu1 %v284_v13  ;;  %807 = vmatprep.mubr.msk.f32.mxu1 %vm921_vm1, %v920_v10  ;;  %p860_p13 = pnand %p859_p12, %p996_p5  ;;  %s922_s17 = smov [#allocation2]  }
  0x1b   : > { %805 = vmatprep.subr.mxu1 %v920_v10  ;;  %s862_s25 = sshll.u32 %s922_s17, 4  ;;  %s863_s25 = int_to_ptr.vmem [resolvable:$false] %s862_s25 }
  0x1c   : > { %791 = vmatmul.mubr.msk.f32.gmra.mxu0 %vm293_vm0, %v273_v5  ;;  %806 = vmatpush3.msra.mxu1 %v283_v14  ;;  %p861_p0 = pneg %p860_p13  ;;  %s864_s18 = scalar_lea.vmem %s863_s25, 256 }
  0x1d   : > { %793 = vmatprep.mubr.msk.f32.mxu0 %vm293_vm0, %v274_v6  ;;  %810 = vmatprep.subr.mxu1 %v920_v10  ;;  %p865_p1 = scmp.lt.s32.totalorder %s672_s11, %s863_s25  ;;  %p866_p2 = scmp.lt.s32.totalorder %s864_s18, %s858_s16 }
  0x1f   : > { %p867_p3 = por %p866_p2, %p865_p1 }
  0x20   : > { %794 = vmatmul.mubr.msk.f32.gmra.mxu0 %vm293_vm0, %v275_v7 }
  0x21   : > { %796 = vmatprep.mubr.msk.f32.mxu0 %vm293_vm0, %v276_v8  ;;  %p868_p4 = pnand %p867_p3, %p861_p0 }
  0x24   : > { %797 = vmatmul.mubr.msk.f32.gmra.mxu0 %vm293_vm0, %v277_v9 }
  0xd8   : > { %v789_v16 = vpop.f32.mrf.mxu0 }
  0xd9   : > { %v390_v17 = vadd.f32 %v789_v16, %v750_v15 }
  0xda   : > { %v384_v18 = vpop.f32.mrf.mxu0 }
  0xdb   : > { %v424_v19 = vmax.f32 %v390_v17, 0.0  ;;  %v385_v20 = vadd.f32 %v750_v15, %v384_v18 }
  0xdc   : > { %v792_v21 = vpop.f32.mrf.mxu0 }
  0xdd   : > { %v439_v22 = vsel %vm431_vm2, %v424_v19, -inf  ;;  %v423_v23 = vmax.f32 %v385_v20, 0.0  ;;  %v400_v24 = vadd.f32 %v792_v21, %v750_v15 }
  0xde   : > { %v440_v25 = vrot.slane %v439_v22, 4  ;;  %v394_v26 = vpop.f32.mrf.mxu0 }
  0xdf   : > { %v432_v27 = vsel %vm431_vm2, %v423_v23, -inf  ;;  %v426_v28 = vmax.f32 %v400_v24, 0.0  ;;  %v395_v29 = vadd.f32 %v750_v15, %v394_v26 }
  0xe0   : > { %v441_v30 = vmax.f32 %v439_v22, %v440_v25  ;;  %v433_v31 = vrot.slane %v432_v27, 4  ;;  %v795_v32 = vpop.f32.mrf.mxu0 }
  0xe1   : > { %v453_v33 = vsel %vm431_vm2, %v426_v28, -inf  ;;  %v425_v34 = vmax.f32 %v395_v29, 0.0  ;;  %v410_v35 = vadd.f32 %v795_v32, %v750_v15 }
  0xe2   : > { %v442_v36 = vrot.slane %v441_v30, 2  ;;  %v434_v37 = vmax.f32 %v432_v27, %v433_v31  ;;  %v454_v38 = vrot.slane %v453_v33, 4  ;;  %v404_v39 = vpop.f32.mrf.mxu0 }
  0xe3   : > { %v446_v40 = vsel %vm431_vm2, %v425_v34, -inf  ;;  %v428_v41 = vmax.f32 %v410_v35, 0.0  ;;  %v405_v42 = vadd.f32 %v750_v15, %v404_v39  ;;  %v282_v39 = vld [vmem:[%s1109_s4 + $0x8] sm:$0xff] }
  0xe4   : > { %v443_v43 = vmax.f32 %v441_v30, %v442_v36  ;;  %v435_v44 = vrot.slane %v434_v37, 2  ;;  %v455_v45 = vmax.f32 %v453_v33, %v454_v38  ;;  %v447_v46 = vrot.slane %v446_v40, 4  ;;  %v798_v47 = vpop.f32.mrf.mxu0 }
  0xe5   : > { %v467_v48 = vsel %vm431_vm2, %v428_v41, -inf  ;;  %v427_v49 = vmax.f32 %v405_v42, 0.0  ;;  %v420_v50 = vadd.f32 %v798_v47, %v750_v15  ;;  %v281_v41 = vld [vmem:[%s1109_s4] sm:$0xff] }
  0xe6   : > { %v436_v51 = vmax.f32 %v434_v37, %v435_v44  ;;  %v456_v52 = vrot.slane %v455_v45, 2  ;;  %v448_v53 = vmax.f32 %v446_v40, %v447_v46  ;;  %v414_v54 = vpop.f32.mrf.mxu0  ;;  %v468_v55 = vrot.slane %v467_v48, 4  ;;  %v269_v42 = vld [vmem:[%s262_s19] sm:$0xff] }
  0xe7   : > { %v460_v56 = vsel %vm431_vm2, %v427_v49, -inf  ;;  %v430_v57 = vmax.f32 %v420_v50, 0.0  ;;  %v415_v58 = vadd.f32 %v750_v15, %v414_v54  ;;  %v444_v59 = vrot.slane %v443_v43, 1 }
  0xe8   : > { %v437_v60 = vrot.slane %v436_v51, 1  ;;  %v449_v61 = vrot.slane %v448_v53, 2  ;;  %v469_v62 = vmax.f32 %v467_v48, %v468_v55  ;;  %v461_v63 = vrot.slane %v460_v56, 4 }
  0xe9   : > { %v481_v0 = vsel %vm431_vm2, %v430_v57, -inf  ;;  %v429_v1 = vmax.f32 %v415_v58, 0.0  ;;  %v457_v2 = vmax.f32 %v455_v45, %v456_v52  ;;  %v445_v12 = vmax.f32 %v443_v43, %v444_v59 }
  0xea   : > { %v450_v3 = vmax.f32 %v448_v53, %v449_v61  ;;  %v482_v4 = vrot.slane %v481_v0, 4  ;;  %v470_v5 = vrot.slane %v469_v62, 2  ;;  %v462_v6 = vmax.f32 %v460_v56, %v461_v63 }
  0xeb   : > { %v474_v7 = vsel %vm431_vm2, %v429_v1, -inf  ;;  %v438_v8 = vmax.f32 %v436_v51, %v437_v60  ;;  %v458_v15 = vrot.slane %v457_v2, 1 }
  0xec   : > { %v451_v9 = vrot.slane %v450_v3, 1  ;;  %v483_v11 = vmax.f32 %v481_v0, %v482_v4  ;;  %v463_v13 = vrot.slane %v462_v6, 2  ;;  %v475_v14 = vrot.slane %v474_v7, 4 }
  0xed   : > { %v471_v17 = vmax.f32 %v469_v62, %v470_v5  ;;  %v497_v21 = vsel %vm496_vm3, %v445_v12, %v438_v8  ;;  %v459_v26 = vmax.f32 %v457_v2, %v458_v15 }
  0xee   : > { %v452_v16 = vmax.f32 %v450_v3, %v451_v9  ;;  %v484_v18 = vrot.slane %v483_v11, 2  ;;  %v464_v19 = vmax.f32 %v462_v6, %v463_v13  ;;  %v476_v20 = vmax.f32 %v474_v7, %v475_v14 }
  0xef   : > { %v472_v27 = vrot.slane %v471_v17, 1 }
  0xf0   : > { %v485_v22 = vmax.f32 %v483_v11, %v484_v18  ;;  %v499_v23 = vsel %vm498_vm4, %v452_v16, %v497_v21  ;;  %v465_v24 = vrot.slane %v464_v19, 1  ;;  %v477_v25 = vrot.slane %v476_v20, 2 }
  0xf1   : > { %v501_v31 = vsel %vm500_vm5, %v459_v26, %v499_v23  ;;  %v473_v34 = vmax.f32 %v471_v17, %v472_v27 }
  0xf2   : > { %v466_v28 = vmax.f32 %v464_v19, %v465_v24  ;;  %v478_v29 = vmax.f32 %v476_v20, %v477_v25  ;;  %v486_v30 = vrot.slane %v485_v22, 1 }
  0xf4   : > { %v479_v32 = vrot.slane %v478_v29, 1  ;;  %v503_v33 = vsel %vm502_vm6, %v466_v28, %v501_v31  ;;  %v487_v36 = vmax.f32 %v485_v22, %v486_v30 }
  0xf5   : > { %v505_v37 = vsel %vm504_vm7, %v473_v34, %v503_v33 }
  0xf6   : > { %v480_v35 = vmax.f32 %v478_v29, %v479_v32 }
  0xf8   : > { %v507_v38 = vsel %vm506_vm8, %v480_v35, %v505_v37 }
  0xf9   : > { %v509_v40 = vsel %vm508_vm9, %v487_v36, %v507_v38 }
  0xfa   : > { %808 = vmatmul.mubr.msk.f32.vlgmr.msra.gmra.mxu1 %vm431_vm2, %v509_v40 }
  0xfb   : > { %811 = vmatpush3.msra.mxu1 %v282_v39  ;;  %814 = vmatprep.mubr.msk.f32.mxu1 %vm921_vm1, %v920_v10 }
  0xfc   : > { %812 = vmatprep.subr.mxu1 %v920_v10 }
  0xfd   : > { %813 = vmatpush3.msra.mxu1 %v281_v41 }
  0xfe   : > { %815 = vmatmul.mubr.msk.f32.vlgmr.msra.gmra.mxu1 %vm293_vm0, %v269_v42 }
 0x1ba   : > { %v578_v43 = vpop.f32.mrf.mxu1 }
 0x1bc   : > { %v809_v44 = vpop.f32.mrf.mxu1 }
 0x1be   : > { %v651_v45 = vpop.f32.mrf.mxu1 }
 0x1bf   : > { %v652_v46 = vadd.f32 %v651_v45, %v578_v43 }
 0x1c0   : > { %v816_v47 = vpop.f32.mrf.mxu1 }
 0x1c1   : > { %v655_v48 = vmax.f32 %v652_v46, 0.0 }
 0x1c3   : > { %656 = vst.msk [vmem:[%s258_s10] sm:$0xff] %vm293_vm0, %v655_v48 }
 0x1c4   : > { %871 = shalt.err (!%p868_p4)
}
 0x1c5   : > { %s872_s19 = scalar_lea.hbm %s669_s14, 128  ;;  %s876_s28 = scalar_lea.hbm %s1111_s6, 256 }
 0x1c6   : > { %p873_p7 = scmp.ne.s32.totalorder %s669_s14, %s872_s19  ;;  %p877_p10 = scmp.lt.s32.totalorder %s669_s14, %s1111_s6 }
 0x1c7   : > { %p878_p11 = scmp.lt.s32.totalorder %s876_s28, %s872_s19 }
 0x1c8   : > { %p874_p8 = pnand %p873_p7, %p996_p5 }
 0x1c9   : > { %p879_p12 = por %p878_p11, %p877_p10 }
 0x1ca   : > { %p875_p9 = pneg %p874_p8 }
 0x1cc   : > { %p880_p13 = pnand %p879_p12, %p875_p9 }
 0x1ce   : > { %883 = shalt.err (!%p880_p13)
}
 0x1cf   : > { %817 = dma.vmem_to_hbm [thread:$0]  (%p996_p5), %s672_s11, 128, %s669_s14, %s658_s15  }
 0x1d0 PF: > { %p823_p0 = scmp.ge.s32.totalorder %s918_s24, 2  ;;  %s683_s10 = sand.u32 1, %s906_s21  }
 0x1d1   : > { %s684_s12 = scalar_lea.sflag [#allocation3], %s683_s10 }
 0x1d2   : > { %p820_p1 = pnand %p823_p0, %p1000_p6 }
 0x1d4   : > { %p821_p2 = pneg %p820_p1 }
 0x1d6   : > { %901 = dma.done.wait (%p821_p2), %s684_s12, 128  }
 0x1d7   : > { %903 = vsyncadd (%p821_p2), %s684_s12, 4294967168  ;;  %p16_p3 = scmp.ge.s32.totalorder %s983_s27, 4   ;;  %s1114_s21 = smov %s910_s22 }
 0x1d8   : > { %s1115_s22 = smov %s914_s23  ;;  %s1116_s23 = smov %s994_s30 }
 0x1d9   : > { %s1117_s24 = smov %s983_s27  ;;  %18 = sbr.rel (!%p16_p3) target bundleno = 3 (0x3), region = 82 }
 0x1de   :  { %689 = vsyncpa [#allocation3], 1 }
 0x1df   :  { %691 = vsyncpa [#allocation3 + $0x1], 1 }

</bundles_post_ra>
